<compile_context>
chip_gen: v5e
topology: v5e:2x2
jax: 0.10.0
libtpu: 0.0.40
codegen_flags: <defaults>
</compile_context>

<pallas_src>
import jax
import jax.numpy as jnp
from jax.experimental import pallas as pl
from jax.experimental.pallas import tpu as pltpu


def _round_up(v, m):
    return (v + m - 1) // m * m


def _cdiv(a, b):
    return -(-a // b)


# --------------------------------------------------------------------------- kernels
def _swiglu_kernel_ws(x_ref, w1g_ref, b1g_ref, w1v_ref, b1v_ref, w2_ref, b2_ref, o_ref):
    """Weight-stationary path: full H resident, grid = (token_tiles, dout_tiles)."""
    x = x_ref[...]
    # fc1 gate/value halves as two lane-aligned MXU matmuls, f32 accumulation.
    x1 = jnp.dot(x, w1g_ref[...], preferred_element_type=jnp.float32) + b1g_ref[...]
    x2 = jnp.dot(x, w1v_ref[...], preferred_element_type=jnp.float32) + b1v_ref[...]
    g = (x1 * jax.lax.logistic(x1)) * x2          # silu(x1) * x2 (EUP + VPU), f32
    y = jnp.dot(g.astype(w2_ref.dtype), w2_ref[...],
                preferred_element_type=jnp.float32) + b2_ref[...]
    o_ref[...] = y.astype(o_ref.dtype)


def _swiglu_kernel_hred(x_ref, w1g_ref, b1g_ref, w1v_ref, b1v_ref, w2_ref, b2_ref,
                        o_ref, acc_ref):
    """H-reduction path: grid = (token_tiles, dout_tiles, h_tiles); h is 'arbitrary'."""
    k = pl.program_id(2)

    @pl.when(k == 0)
    def _():
        acc_ref[...] = jnp.zeros_like(acc_ref)

    x = x_ref[...]
    x1 = jnp.dot(x, w1g_ref[...], preferred_element_type=jnp.float32) + b1g_ref[...]
    x2 = jnp.dot(x, w1v_ref[...], preferred_element_type=jnp.float32) + b1v_ref[...]
    g = (x1 * jax.lax.logistic(x1)) * x2
    acc_ref[...] += jnp.dot(g.astype(w2_ref.dtype), w2_ref[...],
                            preferred_element_type=jnp.float32)

    @pl.when(k == pl.num_programs(2) - 1)
    def _():
        o_ref[...] = (acc_ref[...] + b2_ref[...]).astype(o_ref.dtype)


# ---------------------------------------------------------------------- device query
def _device_params():
    kind = ""
    try:
        kind = jax.devices()[0].device_kind.lower()
    except Exception:
        pass
    is_v7 = ("v7" in kind) or ("7x" in kind)
    is_v6 = "v6" in kind
    is_v5e = ("v5e" in kind) or ("v5 lite" in kind) or ("v5litepod" in kind)
    vmem_cap = None
    try:
        cap = int(getattr(pltpu.get_tpu_info(), "vmem_capacity_bytes", 0))
        vmem_cap = cap if cap > 0 else None
    except Exception:
        vmem_cap = None
    if vmem_cap is None:
        vmem_cap = (64 << 20) if is_v7 else (128 << 20)
    return vmem_cap, is_v5e, is_v6, is_v7


_FALLBACK_ERRORS = (TypeError, ValueError, NotImplementedError)
if hasattr(pltpu, "LoweringException"):
    _FALLBACK_ERRORS = _FALLBACK_ERRORS + (pltpu.LoweringException,)


# --------------------------------------------------------------------------- wrapper
def swiglu_mlp(x, w1, b1, w2, b2, *, block_tokens=None, block_h=None, block_out=None,
               compute_dtype=None):
    """Fused SwiGLU MLP forward.

    x:  (..., D_in)
    w1: (D_in, H)      fc1 weight, transposed (y = x @ w1 + b1), H even
    b1: (H,)
    w2: (H//2, D_out)  fc2 weight, transposed
    b2: (D_out,)
    compute_dtype: optional (e.g. jnp.bfloat16) MXU dtype for x / weights; biases and
                   accumulation stay f32, output keeps x.dtype (changes numerics).
    """
    orig_shape = x.shape
    out_dtype = x.dtype
    d_in = orig_shape[-1]
    h_total = w1.shape[1]
    assert h_total % 2 == 0, "hidden_features must be even (chunk(2, dim=-1))"
    h_half = h_total // 2
    d_out = w2.shape[1]

    # ---- optional reduced-precision compute path (opt-in) ----
    if compute_dtype is not None:
        x = x.astype(compute_dtype)
        w1 = w1.astype(compute_dtype)
        w2 = w2.astype(compute_dtype)

    # ---- split fc1 into gate / value halves (removes the in-kernel lane slice) ----
    w1g, w1v = w1[:, :h_half], w1[:, h_half:]
    b1g, b1v = b1[:h_half], b1[h_half:]

    x2d = x.reshape(-1, d_in)
    n = x2d.shape[0]

    xbytes = jnp.dtype(x.dtype).itemsize
    wbytes = jnp.dtype(w1.dtype).itemsize
    obytes = jnp.dtype(out_dtype).itemsize

    vmem_cap, is_v5e, is_v6, is_v7 = _device_params()
    budget = int(0.80 * vmem_cap)            # headroom for compiler internals
    lane_mult = 128 if is_v5e else 256       # v6e/v7x MXU is 2x256x256; v5e is 4x128x128

    def _lane_round(d):
        return _round_up(d, lane_mult if d > 128 else 128)

    d_in_p = _round_up(d_in, 128)
    h_pref = _lane_round(h_half)
    d_pref = _lane_round(d_out)

    # ---- token tile (VMEM-aware per generation) ----
    if block_tokens is not None:
        tn = _round_up(min(block_tokens, max(n, 1)), 8)
    else:
        if is_v7:
            tn = 256
        elif is_v6:
            tn = 1024 if xbytes <= 2 else 512
        else:
            tn = 512 if xbytes <= 2 else 256
        tn = min(tn, _round_up(max(n, 8), 8))

    tk = h_pref if block_h is None else max(128, min(_round_up(block_h, 128), h_pref))
    td = d_pref if block_out is None else max(128, min(_round_up(block_out, 128), d_pref))

    def _footprint(tn_, tk_, td_, weight_bufs, with_acc):
        weights = weight_bufs * (2 * d_in_p * tk_ + tk_ * td_) * wbytes
        biases = weight_bufs * 2 * tk_ * 4 + 2 * td_ * 4
        io = 2 * tn_ * (d_in_p * xbytes + td_ * obytes)       # double-buffered x / out
        acc = tn_ * td_ * 4 if with_acc else 0
        act = tn_ * (3 * tk_ + td_) * 4                       # f32 x1 / x2 / g / y
        return weights + biases + io + acc + act

    def _fits(tn_, tk_, td_):
        red = (_cdiv(h_half, tk_) > 1) or (block_h is not None)
        return _footprint(tn_, tk_, td_, 2 if red else 1, red) <= budget

    # Shrink tiles until the footprint fits the device budget.  Priority: stream the
    # hidden dim first (switches to the H-reduction kernel), then d_out, then tokens.
    # User-pinned dims are never shrunk.
    for _ in range(64):
        if _fits(tn, tk, td):
            break
        if block_h is None and tk > 512:
            tk = max(512, (tk // 2) // 128 * 128)
        elif block_out is None and td > 512:
            td = max(512, (td // 2) // 128 * 128)
        elif block_tokens is None and tn > 128:
            tn = max(128, (tn // 2) // 8 * 8)
        elif block_h is None and tk > 128:
            tk = max(128, (tk // 2) // 128 * 128)
        elif block_out is None and td > 128:
            td = max(128, (td // 2) // 128 * 128)
        elif block_tokens is None and tn > 8:
            tn = max(8, (tn // 2) // 8 * 8)
        else:
            break   # cannot shrink further; the vmem_limit clamp below still protects

    nk = _cdiv(h_half, tk)
    h_half_p = nk * tk
    nd = _cdiv(d_out, td)
    d_out_p = nd * td
    n_p = _cdiv(max(n, 1), tn) * tn
    nt = n_p // tn
    use_reduction = (nk > 1) or (block_h is not None)

    # Low-token (decode) shapes on v7x: split d_out so both TensorCores get work.
    if nt < 2 and nd == 1 and is_v7 and td >= 256 and td % 256 == 0:
        td //= 2
        nd = d_out_p // td

    # ---- zero padding (mathematically inert: padded cols/rows contribute 0) ----
    def pad2(a, rows, cols):
        return jnp.pad(a, ((0, rows - a.shape[0]), (0, cols - a.shape[1])))

    x_p = pad2(x2d, n_p, d_in_p)
    w1g_p = pad2(w1g, d_in_p, h_half_p)
    w1v_p = pad2(w1v, d_in_p, h_half_p)
    w2_p = pad2(w2, h_half_p, d_out_p)
    b1g_p = pad2(b1g.reshape(1, -1).astype(jnp.float32), 1, h_half_p)
    b1v_p = pad2(b1v.reshape(1, -1).astype(jnp.float32), 1, h_half_p)
    b2_p = pad2(b2.reshape(1, -1).astype(jnp.float32), 1, d_out_p)

    # ---- advisory cost estimate for XLA scheduling around the custom call ----
    flops = 2 * n_p * (2 * d_in_p * h_half_p + h_half_p * d_out_p)
    bytes_accessed = (n_p * d_in_p * xbytes + n_p * d_out_p * obytes
                      + (2 * d_in_p * h_half_p + h_half_p * d_out_p) * wbytes
                      + (2 * h_half_p + d_out_p) * 4)
    cost = pl.CostEstimate(flops=int(flops), transcendentals=int(n_p * h_half_p),
                           bytes_accessed=int(bytes_accessed))

    out_struct = jax.ShapeDtypeStruct((n_p, d_out_p), out_dtype)
    args = (x_p, w1g_p, b1g_p, w1v_p, b1v_p, w2_p, b2_p)

    def _vmem_limit(weight_bufs):
        fp = _footprint(tn, tk, td, weight_bufs, use_reduction)
        return int(min(int(0.90 * vmem_cap), max(32 << 20, 2 * fp)))

    def _run(single_buffer_weights):
        if use_reduction:
            grid = (nt, nd, nk)
            in_specs = [
                pl.BlockSpec((tn, d_in_p), lambda i, j, k: (i, 0)),
                pl.BlockSpec((d_in_p, tk), lambda i, j, k: (0, k)),
                pl.BlockSpec((1, tk), lambda i, j, k: (0, k)),
                pl.BlockSpec((d_in_p, tk), lambda i, j, k: (0, k)),
                pl.BlockSpec((1, tk), lambda i, j, k: (0, k)),
                pl.BlockSpec((tk, td), lambda i, j, k: (k, j)),
                pl.BlockSpec((1, td), lambda i, j, k: (0, j)),
            ]
            out_specs = pl.BlockSpec((tn, td), lambda i, j, k: (i, j))
            scratch = [pltpu.VMEM((tn, td), jnp.float32)]
            kernel = _swiglu_kernel_hred
            semantics = ("parallel", "parallel", "arbitrary")
            vmem_limit = _vmem_limit(2)
        else:
            # Constant-index weight/bias blocks are single-buffered so they occupy
            # 1x (not 2x) VMEM; W2/b2 stay double-buffered if they vary with j.
            w_kw, w2_kw = {}, {}
            if single_buffer_weights and hasattr(pl, "Buffered"):
                w_kw = {"pipeline_mode": pl.Buffered(1)}
                w2_kw = w_kw if nd == 1 else {}
            grid = (nt, nd)
            in_specs = [
                pl.BlockSpec((tn, d_in_p), lambda i, j: (i, 0)),
                pl.BlockSpec((d_in_p, h_half_p), lambda i, j: (0, 0), **w_kw),
                pl.BlockSpec((1, h_half_p), lambda i, j: (0, 0), **w_kw),
                pl.BlockSpec((d_in_p, h_half_p), lambda i, j: (0, 0), **w_kw),
                pl.BlockSpec((1, h_half_p), lambda i, j: (0, 0), **w_kw),
                pl.BlockSpec((h_half_p, td), lambda i, j: (0, j), **w2_kw),
                pl.BlockSpec((1, td), lambda i, j: (0, j), **w2_kw),
            ]
            out_specs = pl.BlockSpec((tn, td), lambda i, j: (i, j))
            scratch = []
            kernel = _swiglu_kernel_ws
            semantics = ("parallel", "parallel")
            vmem_limit = _vmem_limit(1 if single_buffer_weights else 2)

        return pl.pallas_call(
            kernel,
            out_shape=out_struct,
            grid_spec=pltpu.PrefetchScalarGridSpec(
                num_scalar_prefetch=0,
                grid=grid,
                in_specs=in_specs,
                out_specs=out_specs,
                scratch_shapes=scratch,
            ),
            compiler_params=pltpu.CompilerParams(
                dimension_semantics=semantics,
                vmem_limit_bytes=vmem_limit,
            ),
            cost_estimate=cost,
        )(*args)

    if use_reduction or not hasattr(pl, "Buffered"):
        out = _run(False)
    else:
        try:
            out = _run(True)
        except _FALLBACK_ERRORS:
            # Fallback: double-buffered weight blocks with a correspondingly larger
            # (but device-clamped) VMEM limit.
            out = _run(False)

    out = out[:n, :d_out]
    return out.reshape(*orig_shape[:-1], d_out)


# -------------------------------------------------------------------------- reference
def _reference(x, w1, b1, w2, b2):
    h = x @ w1 + b1
    half = h.shape[-1] // 2
    x1, x2 = h[..., :half], h[..., half:]
    g = jax.nn.silu(x1) * x2
    return g @ w2 + b2


def _make_params(key, d_in, hidden, d_out, dtype=jnp.float32):
    k1, kb1, k2, kb2 = jax.random.split(key, 4)
    w1 = jax.random.normal(k1, (d_in, hidden), dtype) * (1.0 / jnp.sqrt(d_in))
    b1 = jax.random.normal(kb1, (hidden,), dtype) * 0.01
    w2 = jax.random.normal(k2, (hidden // 2, d_out), dtype) * (1.0 / jnp.sqrt(hidden // 2))
    b2 = jax.random.normal(kb2, (d_out,), dtype) * 0.01
    return w1, b1, w2, b2


if __name__ == "__main__":
    key = jax.random.PRNGKey(0)
    k0, k1, k2 = jax.random.split(key, 3)
    batch, seq = 2, 8

    # --- Test 1: module config (in=hidden=out=32), weight-stationary kernel path. ---
    x = jax.random.normal(k0, (batch, seq, 32), jnp.float32)
    w1, b1, w2, b2 = _make_params(k1, 32, 32, 32)
    y = jax.block_until_ready(swiglu_mlp(x, w1, b1, w2, b2, block_tokens=8))
    y_ref = _reference(x, w1, b1, w2, b2)
    assert y.shape == (batch, seq, 32)
    assert jnp.allclose(y, y_ref, atol=1e-5, rtol=1e-5), "weight-stationary path mismatch"

    # --- Test 2: odd dims + forced H-reduction + d_out tiling (reduction kernel). ---
    xb = jax.random.normal(k2, (batch, seq, 48), jnp.float32)
    w1b, b1b, w2b, b2b = _make_params(k1, 48, 384, 200)
    yb = jax.block_until_ready(
        swiglu_mlp(xb, w1b, b1b, w2b, b2b, block_tokens=8, block_h=128, block_out=128))
    yb_ref = _reference(xb, w1b, b1b, w2b, b2b)
    assert yb.shape == (batch, seq, 200)
    assert jnp.allclose(yb, yb_ref, atol=1e-4, rtol=1e-4), "H-reduction path mismatch"

    # --- Test 3: opt-in bf16 compute path (numerics change; looser tolerance). ---
    yc = jax.block_until_ready(
        swiglu_mlp(x, w1, b1, w2, b2, block_tokens=8, compute_dtype=jnp.bfloat16))
    assert jnp.allclose(yc, y_ref, atol=5e-2, rtol=5e-2), "bf16 compute path mismatch"

    print("KERNEL_OK")
</pallas_src>

<mosaic_0001>
module attributes {stable_mosaic.version = 11 : i64} {
  func.func @_swiglu_kernel_ws(%arg0: i32, %arg1: i32, %arg2: memref<8x128xf32, #tpu.memory_space<vmem>>, %arg3: memref<128x128xf32, #tpu.memory_space<vmem>>, %arg4: memref<1x128xf32, #tpu.memory_space<vmem>>, %arg5: memref<128x128xf32, #tpu.memory_space<vmem>>, %arg6: memref<1x128xf32, #tpu.memory_space<vmem>>, %arg7: memref<128x128xf32, #tpu.memory_space<vmem>>, %arg8: memref<1x128xf32, #tpu.memory_space<vmem>>, %arg9: memref<8x128xf32, #tpu.memory_space<vmem>>) attributes {dimension_semantics = [#tpu.dimension_semantics<parallel>, #tpu.dimension_semantics<parallel>], iteration_bounds = array<i64: 2, 1>, scalar_prefetch = 0 : i64, scratch_operands = 0 : i64, tpu.core_type = #tpu.core_type<tc>, window_params = [{transform_indices = @transform_0, window_bounds = array<i64: 8, 128>}, {pipeline_mode = #tpu.pipeline_mode<synchronous>, transform_indices = @transform_1, window_bounds = array<i64: 128, 128>}, {pipeline_mode = #tpu.pipeline_mode<synchronous>, transform_indices = @transform_2, window_bounds = array<i64: 1, 128>}, {pipeline_mode = #tpu.pipeline_mode<synchronous>, transform_indices = @transform_3, window_bounds = array<i64: 128, 128>}, {pipeline_mode = #tpu.pipeline_mode<synchronous>, transform_indices = @transform_4, window_bounds = array<i64: 1, 128>}, {pipeline_mode = #tpu.pipeline_mode<synchronous>, transform_indices = @transform_5, window_bounds = array<i64: 128, 128>}, {pipeline_mode = #tpu.pipeline_mode<synchronous>, transform_indices = @transform_6, window_bounds = array<i64: 1, 128>}, {transform_indices = @transform_7, window_bounds = array<i64: 8, 128>}]} {
    %c0 = arith.constant 0 : index
    %c0_0 = arith.constant 0 : index
    %0 = vector.load %arg2[%c0, %c0_0] : memref<8x128xf32, #tpu.memory_space<vmem>>, vector<8x128xf32>
    %c0_1 = arith.constant 0 : index
    %c0_2 = arith.constant 0 : index
    %1 = vector.load %arg3[%c0_1, %c0_2] : memref<128x128xf32, #tpu.memory_space<vmem>>, vector<128x128xf32>
    %cst = arith.constant dense<0.000000e+00> : vector<8x128xf32>
    %2 = tpu.matmul %0, %1, %cst {dimension_numbers = #tpu.dot_dimension_numbers<[1], [0], [0], [1], [0, 0, 1, 1], [], []>} : vector<8x128xf32>, vector<128x128xf32>, vector<8x128xf32> -> vector<8x128xf32>
    %c0_3 = arith.constant 0 : index
    %c0_4 = arith.constant 0 : index
    %3 = vector.load %arg4[%c0_3, %c0_4] : memref<1x128xf32, #tpu.memory_space<vmem>>, vector<1x128xf32>
    %4 = vector.broadcast %3 : vector<1x128xf32> to vector<8x128xf32>
    %5 = arith.addf %2, %4 : vector<8x128xf32>
    %c0_5 = arith.constant 0 : index
    %c0_6 = arith.constant 0 : index
    %6 = vector.load %arg5[%c0_5, %c0_6] : memref<128x128xf32, #tpu.memory_space<vmem>>, vector<128x128xf32>
    %cst_7 = arith.constant dense<0.000000e+00> : vector<8x128xf32>
    %7 = tpu.matmul %0, %6, %cst_7 {dimension_numbers = #tpu.dot_dimension_numbers<[1], [0], [0], [1], [0, 0, 1, 1], [], []>} : vector<8x128xf32>, vector<128x128xf32>, vector<8x128xf32> -> vector<8x128xf32>
    %c0_8 = arith.constant 0 : index
    %c0_9 = arith.constant 0 : index
    %8 = vector.load %arg6[%c0_8, %c0_9] : memref<1x128xf32, #tpu.memory_space<vmem>>, vector<1x128xf32>
    %9 = vector.broadcast %8 : vector<1x128xf32> to vector<8x128xf32>
    %10 = arith.addf %7, %9 : vector<8x128xf32>
    %11 = arith.negf %5 : vector<8x128xf32>
    %12 = math.exp %11 : vector<8x128xf32>
    %cst_10 = arith.constant 1.000000e+00 : f32
    %13 = vector.broadcast %cst_10 : f32 to vector<8x128xf32>
    %14 = arith.addf %13, %12 : vector<8x128xf32>
    %15 = arith.divf %13, %14 : vector<8x128xf32>
    %16 = arith.mulf %5, %15 : vector<8x128xf32>
    %17 = arith.mulf %16, %10 : vector<8x128xf32>
    %c0_11 = arith.constant 0 : index
    %c0_12 = arith.constant 0 : index
    %18 = vector.load %arg7[%c0_11, %c0_12] : memref<128x128xf32, #tpu.memory_space<vmem>>, vector<128x128xf32>
    %cst_13 = arith.constant dense<0.000000e+00> : vector<8x128xf32>
    %19 = tpu.matmul %17, %18, %cst_13 {dimension_numbers = #tpu.dot_dimension_numbers<[1], [0], [0], [1], [0, 0, 1, 1], [], []>} : vector<8x128xf32>, vector<128x128xf32>, vector<8x128xf32> -> vector<8x128xf32>
    %c0_14 = arith.constant 0 : index
    %c0_15 = arith.constant 0 : index
    %20 = vector.load %arg8[%c0_14, %c0_15] : memref<1x128xf32, #tpu.memory_space<vmem>>, vector<1x128xf32>
    %21 = vector.broadcast %20 : vector<1x128xf32> to vector<8x128xf32>
    %22 = arith.addf %19, %21 : vector<8x128xf32>
    %c0_16 = arith.constant 0 : index
    %c0_17 = arith.constant 0 : index
    %23 = vector.load %arg9[%c0_16, %c0_17] : memref<8x128xf32, #tpu.memory_space<vmem>>, vector<8x128xf32>
    tpu.vector_store %arg9[%c0_16, %c0_17], %22 {strides = array<i32>} : memref<8x128xf32, #tpu.memory_space<vmem>>, vector<8x128xf32>,
    return
  }
  func.func @transform_0(%arg0: i32, %arg1: i32) -> (i32, i32) {
    %c0_i32 = arith.constant 0 : i32
    %c0_i32_0 = arith.constant 0 : i32
    return %arg0, %c0_i32 : i32, i32
  }
  func.func @transform_1(%arg0: i32, %arg1: i32) -> (i32, i32) {
    %c0_i32 = arith.constant 0 : i32
    %c0_i32_0 = arith.constant 0 : i32
    %c0_i32_1 = arith.constant 0 : i32
    return %c0_i32, %c0_i32_0 : i32, i32
  }
  func.func @transform_2(%arg0: i32, %arg1: i32) -> (i32, i32) {
    %c0_i32 = arith.constant 0 : i32
    %c0_i32_0 = arith.constant 0 : i32
    %c0_i32_1 = arith.constant 0 : i32
    return %c0_i32, %c0_i32_0 : i32, i32
  }
  func.func @transform_3(%arg0: i32, %arg1: i32) -> (i32, i32) {
    %c0_i32 = arith.constant 0 : i32
    %c0_i32_0 = arith.constant 0 : i32
    %c0_i32_1 = arith.constant 0 : i32
    return %c0_i32, %c0_i32_0 : i32, i32
  }
  func.func @transform_4(%arg0: i32, %arg1: i32) -> (i32, i32) {
    %c0_i32 = arith.constant 0 : i32
    %c0_i32_0 = arith.constant 0 : i32
    %c0_i32_1 = arith.constant 0 : i32
    return %c0_i32, %c0_i32_0 : i32, i32
  }
  func.func @transform_5(%arg0: i32, %arg1: i32) -> (i32, i32) {
    %c0_i32 = arith.constant 0 : i32
    %c0_i32_0 = arith.constant 0 : i32
    return %c0_i32, %arg1 : i32, i32
  }
  func.func @transform_6(%arg0: i32, %arg1: i32) -> (i32, i32) {
    %c0_i32 = arith.constant 0 : i32
    %c0_i32_0 = arith.constant 0 : i32
    return %c0_i32, %arg1 : i32, i32
  }
  func.func @transform_7(%arg0: i32, %arg1: i32) -> (i32, i32) {
    %c0_i32 = arith.constant 0 : i32
    return %arg0, %arg1 : i32, i32
  }
}

</mosaic_0001>

<bundles_post_ra>
// kernel: tpu_custom_call.1
= control target key start
LH: loop header
LB: loop body
LE: loop exit
PB: predicated region body
PF: predicated region fallthrough
CT: control target
= control target key end

     0   :  { %s1226_s0 = inlined_call_operand.hbm [shape: f32[16,128], index: 0, kind: input, shape index: {}]   ;;  %s1227_s1 = inlined_call_operand.hbm [shape: f32[128,128], index: 1, kind: input, shape index: {}]   ;;  %s1228_s2 = inlined_call_operand.vmem [shape: f32[1,128], index: 2, kind: input, shape index: {}]   ;;  %s1229_s3 = inlined_call_operand.hbm [shape: f32[128,128], index: 3, kind: input, shape index: {}]   ;;  %s1230_s4 = inlined_call_operand.vmem [shape: f32[1,128], index: 4, kind: input, shape index: {}]   ;;  %s1231_s5 = inlined_call_operand.hbm [shape: f32[128,128], index: 5, kind: input, shape index: {}]   ;;  %s1232_s6 = inlined_call_operand.vmem [shape: f32[1,128], index: 6, kind: input, shape index: {}]   ;;  %s1233_s7 = inlined_call_operand.hbm [shape: f32[16,128], index: 7, kind: output, shape index: {}]  }
   0x1   :  { %1234 = sst [smem:[#allocation15_spill]] %s1227_s1 }
   0x2   :  { %1235 = sst [smem:[#allocation16_spill]] %s1229_s3 }
   0x3   :  { %12 = vsyncpa [#allocation3], 0 }
   0x4   :  { %14 = vsyncpa [#allocation3 + $0x1], 0 }
   0x5   :  { %15 = vsyncpa [#allocation6], 0 }
   0x6   :  { %16 = vsyncpa [#allocation9], 0 }
   0x7   :  { %17 = vsyncpa [#allocation4], 0 }
   0x8   :  { %19 = vsyncpa [#allocation4 + $0x1], 0  ;;  %s1043_s24 = smov 0   ;;  %s1045_s25 = smov 0  }
   0x9   :  { %s1047_s26 = smov 0   ;;  %s1049_s27 = smov 0  }
   0xa   :  { %s1051_s28 = smov 0   ;;  %s1053_s29 = smov 0  }
   0xb LB: > { %s663_s30 = sadd.s32 4294967295, %s996_s29   ;;  %p665_p0 = scmp.ge.s32.totalorder %s996_s29, 1  ;;  %s996_s29 = sphi %s1053_s29, %s25_s29   ;;  %s992_s28 = sphi %s1051_s28, %s1249_s28   ;;  %s988_s27 = sphi %s1049_s27, %s1248_s27   ;;  %s984_s26 = sphi %s1047_s26, %s1247_s26   ;;  %s980_s25 = sphi %s1045_s25, %s1246_s25   ;;  %s976_s24 = sphi %s1043_s24, %s1245_s24  }
   0xc   : > { %p1077_p1 = scmp.eq.s32.totalorder %s663_s30, 0  ;;  %p232_p2 = scmp.lt.s32.totalorder %s996_s29, 3 }
   0xd   : > { %s1237_s1 = sld [smem:[#allocation15_spill]]  ;;  %s998_s13 = smov [#allocation5]  }
   0xe   : > { %p1085_p3 = pnand %p665_p0, %p232_p2  ;;  %s245_s14 = sshll.u32 %s998_s13, 4  ;;  %s246_s14 = int_to_ptr.vmem [resolvable:$true] %s245_s14 }
   0xf   : > { %p670_p6 = scmp.ge.s32.totalorder %s996_s29, 2  ;;  %s1240_s3 = sld [smem:[#allocation16_spill]] }
  0x10   : > { %p700_p4 = pneg %p1085_p3  ;;  %s999_s19 = smov 128  }
  0x11   : > { %s1000_s20 = smov 8   ;;  %s1001_s21 = smov [#allocation7]  }
  0x12   : > { %p1093_p5 = pnand %p700_p4, %p1077_p1  ;;  %s262_s22 = sshll.u32 %s1001_s21, 4  ;;  %s263_s22 = int_to_ptr.vmem [resolvable:$true] %s262_s22 }
  0x13   : > { %s243_s11 = sshll.u32 %s1237_s1, 4  ;;  %s279_s10 = sshll.u32 %s1231_s5, 4  ;;  %s244_s11 = int_to_ptr.hbm [resolvable:$true] %s243_s11  ;;  %s280_s10 = int_to_ptr.hbm [resolvable:$true] %s279_s10 }
  0x14   : > { %703 = dma.hbm_to_vmem [thread:$0]  (!%p1093_p5), %s244_s11, 2048, %s246_s14, [#allocation6], %s999_s19, %s999_s19, %s1000_s20  }
  0x15   : > { %s260_s18 = sshll.u32 %s1240_s3, 4  ;;  %s1002_s13 = smov [#allocation8]   ;;  %s261_s18 = int_to_ptr.hbm [resolvable:$true] %s260_s18 }
  0x16   : > { %706 = dma.hbm_to_vmem [thread:$0]  (!%p1093_p5), %s261_s18, 2048, %s263_s22, [#allocation6], %s999_s19, %s999_s19, %s1000_s20  }
  0x17   : > { %s281_s16 = sshll.u32 %s1002_s13, 4  ;;  %s664_s11 = sadd.s32 4294967294, %s996_s29   ;;  %s282_s16 = int_to_ptr.vmem [resolvable:$true] %s281_s16 }
  0x18   : > { %709 = dma.hbm_to_vmem [thread:$0]  (!%p1093_p5), %s280_s10, 2048, %s282_s16, [#allocation9], %s999_s19, %s999_s19, %s1000_s20  }
  0x19   : > { %s37_s14 = sadd.s32 1, %s992_s28  ;;  %s44_s17 = sadd.s32 1, %s984_s26 }
  0x1a   : > { %p39_p7 = scmp.ge.s32.totalorder %s37_s14, 2  ;;  %p51_p8 = scmp.ne.s32.totalorder %s984_s26, %s980_s25 }
  0x1b   : > { %p52_p9 = scmp.eq.s32.totalorder %s996_s29, 0  ;;  %p57_p10 = scmp.ne.s32.totalorder %s980_s25, %s976_s24 }
  0x1c   : > { %s1251_s14 = smov (%p39_p7, %s37_s14), 0  ;;  %p219_p13 = scmp.eq.s32.totalorder %s663_s30, 1 }
  0x1d   : > { %p1120_p11 = por %p52_p9, %p51_p8  ;;  %p1126_p12 = por %p1077_p1, %p57_p10 }
  0x1e   : > { %s41_s19 = ssub.s32 %s992_s28, %s1251_s14  ;;  %p225_p2 = scmp.eq.s32.totalorder %s664_s11, 1 }
  0x1f   : > { %p42_p0 = scmp.eq.s32.totalorder %s41_s19, 0  ;;  %p1134_p4 = por %p219_p13, %p51_p8 }
  0x20   : > { %p721_p5 = scmp.lt.s32.totalorder %s996_s29, 2  ;;  %p1142_p7 = por %p225_p2, %p57_p10 }
  0x21   : > { %s1140_s21 = scalar_select %p42_p0, %s984_s26, %s44_s17  }
  0x22   : > { %s301_s23 = sand.u32 1, %s984_s26   ;;  %s672_s10 = sshll.u32 %s992_s28, 3 }
  0x23   : > { %s671_s9 = sshll.u32 %s301_s23, 3  ;;  %s309_s30 = scalar_lea.hbm %s1226_s0, %s672_s10 }
  0x24   : > { %s305_s19 = scalar_lea.vmem [#allocation2], %s671_s9  ;;  %s311_s1 = sshll.u32 %s309_s30, 4  ;;  %s312_s1 = int_to_ptr.hbm [resolvable:$true] %s311_s1 }
  0x25   : > { %s313_s11 = sshll.u32 %s305_s19, 4  ;;  %p711_p8 = pnand %p721_p5, %p1120_p11  ;;  %s314_s11 = int_to_ptr.vmem [resolvable:$true] %s313_s11 }
  0x26   : > { %s302_s17 = scalar_lea.sflag [#allocation3], %s301_s23  ;;  %322 = sbr.rel (%p1085_p3) target bundleno = 377 (0x179), region = 48 }
  0x27   : > { %713 = dma.hbm_to_vmem [thread:$0]  (!%p711_p8), %s312_s1, 128, %s314_s11, %s302_s17  }
  0x28   : > { %s1156_s3 = sand.u32 (!%p1085_p3), 1, %s980_s25  }
  0x29   : > { %s674_s10 = sshll.u32 (!%p1085_p3), %s1156_s3, 3  ;;  %s325_s9 = scalar_lea.sflag (!%p1085_p3), [#allocation3], %s1156_s3 }
  0x2a   : > { %s1162_s13 = scalar_lea.vmem (!%p1085_p3), [#allocation2], %s674_s10 }
  0x2b   : > { %959 = dma.done.wait (%p1126_p12), %s325_s9, 128  }
  0x2c   : > { %961 = vsyncadd (%p1126_p12), %s325_s9, 4294967168 }
  0x2d   : > { %963 = dma.done.wait (%p1077_p1), [#allocation6], 4096  }
  0x2e   : > { %965 = vsyncadd (%p1077_p1), [#allocation6], 4294963200 }
  0x2f   : > { %967 = dma.done.wait (%p1077_p1), [#allocation9], 2048  }
  0x30   : > { %969 = vsyncadd (%p1077_p1), [#allocation9], 4294965248  ;;  %v397_v0 = vld [vmem:[#allocation5 + $0x78] sm:$0xff]  ;;  %v396_v1 = vld [vmem:[#allocation5 + $0x70] sm:$0xff]  ;;  %s681_s15 = sshll.u32 %s988_s27, 3  ;;  %s377_s17 = scalar_lea.vmem [#allocation10], %s674_s10 }
  0x31   : > { %402 = vmatpush.msra.mxu0 %v397_v0  ;;  %v395_v2 = vld [vmem:[#allocation5 + $0x68] sm:$0xff]  ;;  %v394_v3 = vld [vmem:[#allocation5 + $0x60] sm:$0xff]  ;;  %v437_v4 = vld [vmem:[#allocation7 + $0x78] sm:$0xff]  ;;  %s536_s30 = scalar_lea.hbm %s1233_s7, %s681_s15  ;;  %s538_s9 = sshll.u32 %s377_s17, 4  ;;  %s539_s9 = int_to_ptr.vmem [resolvable:$true] %s538_s9 }
  0x32   : > { %v393_v5 = vld [vmem:[#allocation5 + $0x58] sm:$0xff]  ;;  %442 = vmatpush.msra.mxu1 %v437_v4  ;;  %v436_v6 = vld [vmem:[#allocation7 + $0x70] sm:$0xff]  ;;  %v435_v7 = vld [vmem:[#allocation7 + $0x68] sm:$0xff]  ;;  %s525_s1 = scalar_lea.sflag [#allocation4], %s1156_s3  ;;  %s926_s15 = scalar_lea.hbm %s1233_s7, 16 }
  0x33   : > { %403 = vmatpush.msra.mxu0 %v396_v1  ;;  %v392_v8 = vld [vmem:[#allocation5 + $0x50] sm:$0xff]  ;;  %v434_v9 = vld [vmem:[#allocation7 + $0x60] sm:$0xff]  ;;  %v391_v10 = vld [vmem:[#allocation5 + $0x48] sm:$0xff] }
  0x34   : > { %443 = vmatpush.msra.mxu1 %v436_v6  ;;  %v433_v11 = vld [vmem:[#allocation7 + $0x58] sm:$0xff]  ;;  %v390_v12 = vld [vmem:[#allocation5 + $0x40] sm:$0xff]  ;;  %v432_v13 = vld [vmem:[#allocation7 + $0x50] sm:$0xff] }
  0x35   : > { %404 = vmatpush.msra.mxu0 %v395_v2  ;;  %v389_v14 = vld [vmem:[#allocation5 + $0x38] sm:$0xff]  ;;  %v431_v15 = vld [vmem:[#allocation7 + $0x48] sm:$0xff]  ;;  %v388_v16 = vld [vmem:[#allocation5 + $0x30] sm:$0xff] }
  0x36   : > { %444 = vmatpush.msra.mxu1 %v435_v7  ;;  %v430_v17 = vld [vmem:[#allocation7 + $0x40] sm:$0xff]  ;;  %v387_v18 = vld [vmem:[#allocation5 + $0x28] sm:$0xff]  ;;  %v429_v19 = vld [vmem:[#allocation7 + $0x38] sm:$0xff] }
  0x37   : > { %405 = vmatpush.msra.mxu0 %v394_v3  ;;  %v386_v20 = vld [vmem:[#allocation5 + $0x20] sm:$0xff]  ;;  %v428_v21 = vld [vmem:[#allocation7 + $0x30] sm:$0xff]  ;;  %v385_v22 = vld [vmem:[#allocation5 + $0x18] sm:$0xff] }
  0x38   : > { %445 = vmatpush.msra.mxu1 %v434_v9  ;;  %v427_v23 = vld [vmem:[#allocation7 + $0x28] sm:$0xff]  ;;  %v384_v24 = vld [vmem:[#allocation5 + $0x10] sm:$0xff]  ;;  %v426_v25 = vld [vmem:[#allocation7 + $0x20] sm:$0xff] }
  0x39   : > { %406 = vmatpush.msra.mxu0 %v393_v5  ;;  %v383_v26 = vld [vmem:[#allocation5 + $0x8] sm:$0xff]  ;;  %v425_v27 = vld [vmem:[#allocation7 + $0x18] sm:$0xff]  ;;  %v382_v28 = vld [vmem:[#allocation5] sm:$0xff] }
  0x3a   : > { %446 = vmatpush.msra.mxu1 %v433_v11  ;;  %v381_v29 = vld [vmem:[%s1162_s13] sm:$0xff]  ;;  %v423_v31 = vld [vmem:[#allocation7 + $0x8] sm:$0xff]  ;;  %v422_v32 = vld [vmem:[#allocation7] sm:$0xff]  ;;  %s540_s13 = sshll.u32 %s536_s30, 4  ;;  %s541_s13 = int_to_ptr.hbm [resolvable:$true] %s540_s13 }
  0x3b   : > { %407 = vmatpush.msra.mxu0 %v392_v8  ;;  %v424_v30 = vld [vmem:[#allocation7 + $0x10] sm:$0xff]  ;;  %v498_v33 = vld [vmem:[#allocation8 + $0x78] sm:$0xff]  ;;  %v496_v35 = vld [vmem:[#allocation8 + $0x68] sm:$0xff]  ;;  %s920_s27 = sshra.s32 %s541_s13, 4  ;;  %s921_s27 = int_to_ptr.hbm [resolvable:$true] %s920_s27 }
  0x3c   : > { %447 = vmatpush.msra.mxu1 %v432_v13  ;;  %503 = vmatpush.msra.mxu2 %v498_v33  ;;  %v497_v34 = vld [vmem:[#allocation8 + $0x70] sm:$0xff]  ;;  %v495_v36 = vld [vmem:[#allocation8 + $0x60] sm:$0xff]  ;;  %v494_v37 = vld [vmem:[#allocation8 + $0x58] sm:$0xff]  ;;  %s922_s8 = scalar_lea.hbm %s921_s27, 8  ;;  %p927_p10 = scmp.lt.s32.totalorder %s921_s27, %s1233_s7 }
  0x3d   : > { %408 = vmatpush.msra.mxu0 %v391_v10  ;;  %v493_v38 = vld [vmem:[#allocation8 + $0x50] sm:$0xff]  ;;  %v492_v39 = vld [vmem:[#allocation8 + $0x48] sm:$0xff]  ;;  %v491_v40 = vld [vmem:[#allocation8 + $0x40] sm:$0xff]  ;;  %p923_p1 = scmp.ne.s32.totalorder %s921_s27, %s922_s8  ;;  %p928_p11 = scmp.lt.s32.totalorder %s926_s15, %s922_s8 }
  0x3e   : > { %448 = vmatpush.msra.mxu1 %v431_v15  ;;  %504 = vmatpush.msra.mxu2 %v497_v34  ;;  %v490_v41 = vld [vmem:[#allocation8 + $0x38] sm:$0xff]  ;;  %v489_v42 = vld [vmem:[#allocation8 + $0x30] sm:$0xff]  ;;  %v488_v43 = vld [vmem:[#allocation8 + $0x28] sm:$0xff] }
  0x3f   : > { %409 = vmatpush.msra.mxu0 %v390_v12  ;;  %v487_v44 = vld [vmem:[#allocation8 + $0x20] sm:$0xff]  ;;  %v486_v45 = vld [vmem:[#allocation8 + $0x18] sm:$0xff]  ;;  %v779_v46 = vld [vmem:[%s1228_s2] ss:$0 sm:$0xff]  ;;  %p924_p3 = pnand %p923_p1, %p1134_p4  ;;  %p929_p12 = por %p928_p11, %p927_p10 }
  0x40   : > { %449 = vmatpush.msra.mxu1 %v430_v17  ;;  %505 = vmatpush.msra.mxu2 %v496_v35  ;;  %v485_v47 = vld [vmem:[#allocation8 + $0x10] sm:$0xff]  ;;  %v484_v48 = vld [vmem:[#allocation8 + $0x8] sm:$0xff]  ;;  %v483_v49 = vld [vmem:[#allocation8] sm:$0xff] }
  0x41   : > { %410 = vmatpush.msra.mxu0 %v389_v14  ;;  %v780_v61 = vld [vmem:[%s1230_s4] ss:$0 sm:$0xff]  ;;  %p925_p9 = pneg %p924_p3 }
  0x42   : > { %450 = vmatpush.msra.mxu1 %v429_v19  ;;  %506 = vmatpush.msra.mxu2 %v495_v36  ;;  %v781_v6 = vld [vmem:[%s1232_s6] ss:$0 sm:$0xff] }
  0x43   : > { %411 = vmatpush.msra.mxu0 %v388_v16  ;;  %p930_p13 = pnand %p929_p12, %p925_p9 }
  0x44   : > { %451 = vmatpush.msra.mxu1 %v428_v21  ;;  %507 = vmatpush.msra.mxu2 %v494_v37 }
  0x45   : > { %412 = vmatpush.msra.mxu0 %v387_v18 }
  0x46   : > { %452 = vmatpush.msra.mxu1 %v427_v23  ;;  %508 = vmatpush.msra.mxu2 %v493_v38 }
  0x47   : > { %413 = vmatpush.msra.mxu0 %v386_v20 }
  0x48   : > { %453 = vmatpush.msra.mxu1 %v426_v25  ;;  %509 = vmatpush.msra.mxu2 %v492_v39 }
  0x49   : > { %414 = vmatpush.msra.mxu0 %v385_v22 }
  0x4a   : > { %454 = vmatpush.msra.mxu1 %v425_v27  ;;  %510 = vmatpush.msra.mxu2 %v491_v40 }
  0x4b   : > { %415 = vmatpush.msra.mxu0 %v384_v24 }
  0x4c   : > { %455 = vmatpush.msra.mxu1 %v424_v30  ;;  %511 = vmatpush.msra.mxu2 %v490_v41 }
  0x4d   : > { %416 = vmatpush.msra.mxu0 %v383_v26 }
  0x4e   : > { %456 = vmatpush.msra.mxu1 %v423_v31  ;;  %512 = vmatpush.msra.mxu2 %v489_v42 }
  0x4f   : > { %417 = vmatpush.msra.mxu0 %v382_v28 }
  0x50   : > { %418 = vmatmul.f32.vlgmr.msra.gmra.mxu0 %v381_v29  ;;  %457 = vmatpush.msra.mxu1 %v422_v32 }
  0x51   : > { %458 = vmatmul.f32.vlgmr.msra.gmra.mxu1 %v381_v29  ;;  %513 = vmatpush.msra.mxu2 %v488_v43 }
  0x53   : > { %514 = vmatpush.msra.mxu2 %v487_v44 }
  0x55   : > { %515 = vmatpush.msra.mxu2 %v486_v45 }
  0x57   : > { %516 = vmatpush.msra.mxu2 %v485_v47 }
  0x59   : > { %517 = vmatpush.msra.mxu2 %v484_v48 }
  0x5b   : > { %518 = vmatpush.msra.mxu2 %v483_v49 }
  0xcd   : > { %v419_v50 = vpop.f32.mrf.mxu0 }
  0xce   : > { %v420_v51 = vadd.f32 %v779_v46, %v419_v50  ;;  %v459_v62 = vpop.f32.mrf.mxu1 }
  0xcf   : > { %v460_v2 = vadd.f32 %v780_v61, %v459_v62 }
  0xd0   : > { %v679_v52 = vmul.f32 -1.442695, %v420_v51 }
  0xd2   : > { %782 = vpow2.f32 %v679_v52 }
  0xd8   : > { %v783_v53 = vpop.eup %782 }
  0xd9   : > { %v465_v54 = vadd.f32 1.0, %v783_v53 }
  0xdb   : > { %784 = vrcp.f32 %v465_v54  ;;  %v477_v58 = vand.u32 2147483648, %v465_v54  ;;  %v475_v60 = vand.u32 2147483647, %v465_v54  ;;  %vm471_vm1 = vweird.f32 %v465_v54 }
  0xdd   : > { %v478_v0 = vor.u32 1.1754944e-38, %v477_v58  ;;  %vm476_vm3 = vcmp.eq.f32.partialorder %v475_v60, 8.507059e+37 }
  0xe1   : > { %v785_v55 = vpop.eup %784 }
  0xe2   : > { %v467_v56 = vmul.f32 %v785_v55, %v465_v54  ;;  %vm472_vm0 = vweird.f32 %v785_v55 }
  0xe3   : > { %vm473_vm2 = vmor %vm471_vm1, %vm472_vm0 }
  0xe4   : > { %v468_v57 = vsub.f32 1.0, %v467_v56 }
  0xe6   : > { %v469_v59 = vmul.f32 %v785_v55, %v468_v57 }
  0xe8   : > { %v470_v63 = vadd.f32 %v785_v55, %v469_v59 }
  0xea   : > { %v474_v1 = vsel %vm473_vm2, %v785_v55, %v470_v63 }
  0xeb   : > { %v479_v3 = vsel %vm476_vm3, %v478_v0, %v474_v1 }
  0xec   : > { %v481_v4 = vmul.f32 %v479_v3, %v420_v51 }
  0xee   : > { %v482_v5 = vmul.f32 %v481_v4, %v460_v2 }
  0xf0   : > { %519 = vmatmul.f32.vlgmr.msra.gmra.mxu2 %v482_v5 }
 0x173   : > { %v520_v7 = vpop.f32.mrf.mxu2 }
 0x174   : > { %v521_v8 = vadd.f32 %v781_v6, %v520_v7 }
 0x176   : > { %523 = vst [vmem:[%s377_s17] sm:$0xff] %v521_v8 }
 0x177   : > { %933 = shalt.err (!%p930_p13)
}
 0x178   : > { %698 = dma.vmem_to_hbm [thread:$0]  (%p1134_p4), %s539_s9, 128, %s541_s13, %s525_s1  }
 0x179 PF: > { %s552_s3 = sand.u32 1, %s976_s24   ;;  %p715_p0 = pnand %p670_p6, %p1142_p7 }
 0x17a   : > { %s553_s16 = scalar_lea.sflag [#allocation4], %s552_s3 }
 0x17b   : > { %p716_p2 = pneg %p715_p0 }
 0x17d   : > { %971 = dma.done.wait (%p716_p2), %s553_s16, 128  }
 0x17e   : > { %973 = vsyncadd (%p716_p2), %s553_s16, 4294967168  ;;  %s25_s29 = sadd.s32 1, %s996_s29   ;;  %s1245_s24 = smov %s980_s25 }
 0x17f   : > { %p22_p5 = scmp.ge.s32.totalorder %s25_s29, 4   ;;  %s1246_s25 = smov %s984_s26 }
 0x180   : > { %s1247_s26 = smov %s1140_s21  ;;  %s1248_s27 = smov %s992_s28 }
 0x181   : > { %s1249_s28 = smov %s1251_s14  ;;  %24 = sbr.rel (!%p22_p5) target bundleno = 11 (0xb), region = 109 }
 0x186   :  { %559 = vsyncpa [#allocation3], 1 }
 0x187   :  { %561 = vsyncpa [#allocation3 + $0x1], 1 }
 0x188   :  { %562 = vsyncpa [#allocation6], 1 }
 0x189   :  { %563 = vsyncpa [#allocation9], 1 }
 0x18a   :  { %564 = vsyncpa [#allocation4], 1 }
 0x18b   :  { %566 = vsyncpa [#allocation4 + $0x1], 1 }

</bundles_post_ra>
